<compile_context>
chip_gen: v7x
topology: tpu7x:2x2x1
jax: 0.10.0
libtpu: 0.0.40
codegen_flags: <defaults>
</compile_context>

<pallas_src>
import functools

import jax
import jax.numpy as jnp
from jax.experimental import pallas as pl
from jax.experimental.pallas import tpu as pltpu

K = 7        # conv kernel size
P = K // 2   # SAME padding


# ---------------------------------------------------------------------------
# Fused kernel: channel mean/max pool -> row-pad -> im2col -> conv -> sigmoid
# ---------------------------------------------------------------------------
def _sam_kernel(x_ref, band_ref, b_ref, o_ref, pad_ref, im2col_ref,
                *, H, W, NB):
    """Blocks:
      x_ref      : (NB, C, H, W)     activations
      band_ref   : (K*2*W, W)        banded conv weights (kw padding folded in)
      b_ref      : (1,) SMEM         conv bias
      o_ref      : (NB*H, W)         output attention-map slab
      pad_ref    : (NB, H+2P, 2*W)   row-padded pooled maps [avg | max]
      im2col_ref : (NB, H, K*2*W)    K row-shifted slabs, lane-concatenated
    """
    x = x_ref[...]
    cdt = pad_ref.dtype

    # Channel pooling (reduction over the leading, untiled C axis).
    avg = jnp.mean(x.astype(jnp.float32), axis=1)          # (NB, H, W) f32 acc
    mx = jnp.max(x, axis=1)                                 # (NB, H, W)
    pooled = jnp.concatenate(
        [avg.astype(cdt), mx.astype(cdt)], axis=-1)         # (NB, H, 2*W)

    # Zero only the P-row halo strips; the interior is fully overwritten each
    # step.  (Every step, not pid==0: each megacore core owns its own scratch.)
    zeros_halo = jnp.zeros((NB, P, 2 * W), cdt)
    pad_ref[:, :P, :] = zeros_halo
    pad_ref[:, P + H:, :] = zeros_halo
    pad_ref[:, P:P + H, :] = pooled                         # lane-offset-0 store

    # im2col: place the K row-shifted slabs side by side along lanes.
    for kh in range(K):                                     # static, unrolled
        im2col_ref[:, :, kh * 2 * W:(kh + 1) * 2 * W] = pad_ref[:, kh:kh + H, :]

    # Single MXU matmul: (NB*H, K*2*W) x (K*2*W, W) -> (NB*H, W), f32 accum.
    lhs = im2col_ref[...].reshape(NB * H, K * 2 * W)
    acc = jnp.dot(lhs, band_ref[...], preferred_element_type=jnp.float32)

    # Bias + sigmoid epilogue.
    o_ref[...] = jax.nn.sigmoid(acc + b_ref[0]).astype(o_ref.dtype)


# ---------------------------------------------------------------------------
# Banded weight construction (folds 2 input channels, kw taps AND column pad)
# ---------------------------------------------------------------------------
def _make_band(w_sp, W, dtype):
    """band[(kh*2 + c)*W + j, w] = w_sp[c, kh, j - w + P] if 0 <= j-w+P < K
                                   else 0
    so that out[h, w] = sum_k im2col[h, k] * band[k, w] reproduces the 7x7
    SAME-padded conv over the 2 pooled channels (column padding is the mask).
    """
    j = jnp.arange(W)[:, None]        # input column
    w_out = jnp.arange(W)[None, :]    # output column
    dw = j - w_out + P                # (W, W) kw tap index
    mask = (dw >= 0) & (dw < K)
    taps = w_sp[:, :, jnp.clip(dw, 0, K - 1)]               # (2, K, W, W)
    band = jnp.where(mask[None, None], taps, 0.0)           # (2, K, W, W)
    band = band.transpose(1, 0, 2, 3).reshape(K * 2 * W, W)  # (kh, c, j) major
    return band.astype(dtype)


def _pick_sample_block(N, H, per_sample_bytes, budget=4 << 20):
    """Largest divisor of N whose x-block fits the budget while keeping the
    (NB*H, W) output block sublane-aligned (or covering the whole batch)."""
    cands = [d for d in range(1, N + 1)
             if N % d == 0 and (d == N or (d * H) % 8 == 0)]
    fits = [d for d in cands if d * per_sample_bytes <= budget]
    return max(fits) if fits else min(cands)


# ---------------------------------------------------------------------------
# Wrapper
# ---------------------------------------------------------------------------
@jax.jit
def spatial_attention(x, w, b):
    """x: (N,C,H,W) f32/bf16; w: (1,2,7,7); b: (1,)  ->  (N,1,H,W)."""
    N, C, H, W = x.shape
    # bf16 activations keep the HBM-bound pipeline in bf16; otherwise f32.
    cdt = jnp.bfloat16 if x.dtype == jnp.bfloat16 else jnp.float32

    band = _make_band(w[0].astype(jnp.float32), W, cdt)     # (K*2*W, W)
    bias = b.astype(jnp.float32)

    NB = _pick_sample_block(N, H, C * H * W * x.dtype.itemsize)
    grid = (N // NB,)
    itemsize = jnp.dtype(cdt).itemsize

    # Rough VMEM need: double-buffered x / band / out blocks + scratch.
    vmem_need = (2 * (NB * C * H * W * x.dtype.itemsize
                      + band.size * itemsize
                      + NB * H * W * x.dtype.itemsize)
                 + (NB * (H + 2 * P) * 2 * W + NB * H * K * 2 * W) * itemsize)
    vmem_limit = int(min(max(2 * vmem_need, 32 << 20), 64 << 20))

    kern = functools.partial(_sam_kernel, H=H, W=W, NB=NB)
    out = pl.pallas_call(
        kern,
        out_shape=jax.ShapeDtypeStruct((N * H, W), x.dtype),
        grid=grid,
        in_specs=[
            pl.BlockSpec((NB, C, H, W), lambda n: (n, 0, 0, 0)),   # x block
            pl.BlockSpec((K * 2 * W, W), lambda n: (0, 0)),        # band (resident)
            pl.BlockSpec(memory_space=pltpu.MemorySpace.SMEM),     # scalar bias
        ],
        out_specs=pl.BlockSpec((NB * H, W), lambda n: (n, 0)),
        scratch_shapes=[
            pltpu.VMEM((NB, H + 2 * P, 2 * W), cdt),   # row-padded pooled maps
            pltpu.VMEM((NB, H, K * 2 * W), cdt),       # im2col slab
        ],
        compiler_params=pltpu.CompilerParams(
            dimension_semantics=("parallel",),
            vmem_limit_bytes=vmem_limit),
    )(x, band, bias)

    # Free metadata reshape back to PyTorch NCHW output layout (N, 1, H, W).
    return out.reshape(N, 1, H, W)


# ---------------------------------------------------------------------------
# Plain-JAX reference for verification
# ---------------------------------------------------------------------------
def ref_forward(x, w, b):
    avg = jnp.mean(x, axis=1, keepdims=True)
    mx = jnp.max(x, axis=1, keepdims=True)
    pooled = jnp.concatenate([avg, mx], axis=1)              # (N, 2, H, W)
    s = jax.lax.conv_general_dilated(
        pooled, w, window_strides=(1, 1), padding=((P, P), (P, P)),
        dimension_numbers=("NCHW", "OIHW", "NCHW"),
        precision=jax.lax.Precision.HIGHEST)
    return jax.nn.sigmoid(s + b.reshape(1, 1, 1, 1))


if __name__ == "__main__":
    N, C, H, W = 2, 16, 16, 16
    key = jax.random.PRNGKey(0)
    kx, kw_, kb = jax.random.split(key, 3)
    x = jax.random.normal(kx, (N, C, H, W), jnp.float32)
    w = jax.random.normal(kw_, (1, 2, K, K), jnp.float32) * 0.2  # Conv2d(2,1,7)
    b = jax.random.normal(kb, (1,), jnp.float32) * 0.1

    out = jax.block_until_ready(spatial_attention(x, w, b))
    assert out.shape == (N, 1, H, W)

    ref = jax.block_until_ready(ref_forward(x, w, b))
    max_err = float(jnp.max(jnp.abs(out - ref)))
    assert jnp.allclose(out, ref, atol=1e-3, rtol=1e-3), max_err
    print("KERNEL_OK")
</pallas_src>

<mosaic_0001>
module attributes {stable_mosaic.version = 11 : i64} {
  func.func @_sam_kernel(%arg0: i32, %arg1: memref<2x16x16x16xf32, #tpu.memory_space<vmem>>, %arg2: memref<224x16xf32, #tpu.memory_space<vmem>>, %arg3: memref<1xf32, #tpu.memory_space<smem>>, %arg4: memref<32x16xf32, #tpu.memory_space<vmem>>, %arg5: memref<2x22x32xf32, #tpu.memory_space<vmem>>, %arg6: memref<2x16x224xf32, #tpu.memory_space<vmem>>) attributes {dimension_semantics = [#tpu.dimension_semantics<parallel>], iteration_bounds = array<i64: 1>, scalar_prefetch = 0 : i64, scratch_operands = 2 : i64, tpu.core_type = #tpu.core_type<tc>, window_params = [{transform_indices = @transform_0, window_bounds = array<i64: 2, 16, 16, 16>}, {pipeline_mode = #tpu.pipeline_mode<synchronous>, transform_indices = @transform_1, window_bounds = array<i64: 224, 16>}, {transform_indices = @transform_2, window_bounds = array<i64: 1>}, {transform_indices = @transform_3, window_bounds = array<i64: 32, 16>}]} {
    %c0 = arith.constant 0 : index
    %c0_0 = arith.constant 0 : index
    %c0_1 = arith.constant 0 : index
    %c0_2 = arith.constant 0 : index
    %0 = vector.load %arg1[%c0, %c0_0, %c0_1, %c0_2] : memref<2x16x16x16xf32, #tpu.memory_space<vmem>>, vector<2x16x16x16xf32>
    %cst = arith.constant dense<0.000000e+00> : vector<2x16x16xf32>
    %1 = vector.multi_reduction <add>, %0, %cst [1] : vector<2x16x16x16xf32> to vector<2x16x16xf32>
    %cst_3 = arith.constant 1.600000e+01 : f32
    %2 = vector.broadcast %cst_3 : f32 to vector<2x16x16xf32>
    %3 = arith.divf %1, %2 : vector<2x16x16xf32>
    %cst_4 = arith.constant dense<0xFF800000> : vector<2x16x16xf32>
    %4 = vector.multi_reduction <maximumf>, %0, %cst_4 [1] : vector<2x16x16x16xf32> to vector<2x16x16xf32>
    %5 = tpu.concatenate %3, %4 in 2 : vector<2x16x16xf32>, vector<2x16x16xf32> -> vector<2x16x32xf32>
    %cst_5 = arith.constant 0.000000e+00 : f32
    %6 = vector.broadcast %cst_5 : f32 to vector<2x3x32xf32>
    %c0_6 = arith.constant 0 : index
    %c0_7 = arith.constant 0 : index
    %c0_8 = arith.constant 0 : index
    %7 = vector.load %arg5[%c0_6, %c0_7, %c0_8] : memref<2x22x32xf32, #tpu.memory_space<vmem>>, vector<2x3x32xf32>
    tpu.vector_store %arg5[%c0_6, %c0_7, %c0_8], %6 {strides = array<i32>} : memref<2x22x32xf32, #tpu.memory_space<vmem>>, vector<2x3x32xf32>,
    %c0_9 = arith.constant 0 : index
    %c19 = arith.constant 19 : index
    %c0_10 = arith.constant 0 : index
    %8 = vector.load %arg5[%c0_9, %c19, %c0_10] : memref<2x22x32xf32, #tpu.memory_space<vmem>>, vector<2x3x32xf32>
    tpu.vector_store %arg5[%c0_9, %c19, %c0_10], %6 {strides = array<i32>} : memref<2x22x32xf32, #tpu.memory_space<vmem>>, vector<2x3x32xf32>,
    %c0_11 = arith.constant 0 : index
    %c3 = arith.constant 3 : index
    %c0_12 = arith.constant 0 : index
    %9 = vector.load %arg5[%c0_11, %c3, %c0_12] : memref<2x22x32xf32, #tpu.memory_space<vmem>>, vector<2x16x32xf32>
    tpu.vector_store %arg5[%c0_11, %c3, %c0_12], %5 {strides = array<i32>} : memref<2x22x32xf32, #tpu.memory_space<vmem>>, vector<2x16x32xf32>,
    %c0_13 = arith.constant 0 : index
    %c0_14 = arith.constant 0 : index
    %c0_15 = arith.constant 0 : index
    %10 = vector.load %arg5[%c0_13, %c0_14, %c0_15] : memref<2x22x32xf32, #tpu.memory_space<vmem>>, vector<2x16x32xf32>
    %c0_16 = arith.constant 0 : index
    %c0_17 = arith.constant 0 : index
    %c0_18 = arith.constant 0 : index
    %11 = vector.load %arg6[%c0_16, %c0_17, %c0_18] : memref<2x16x224xf32, #tpu.memory_space<vmem>>, vector<2x16x32xf32>
    tpu.vector_store %arg6[%c0_16, %c0_17, %c0_18], %10 {strides = array<i32>} : memref<2x16x224xf32, #tpu.memory_space<vmem>>, vector<2x16x32xf32>,
    %c0_19 = arith.constant 0 : index
    %c1 = arith.constant 1 : index
    %c0_20 = arith.constant 0 : index
    %12 = vector.load %arg5[%c0_19, %c1, %c0_20] : memref<2x22x32xf32, #tpu.memory_space<vmem>>, vector<2x16x32xf32>
    %c0_21 = arith.constant 0 : index
    %c0_22 = arith.constant 0 : index
    %c32 = arith.constant 32 : index
    %13 = vector.load %arg6[%c0_21, %c0_22, %c32] : memref<2x16x224xf32, #tpu.memory_space<vmem>>, vector<2x16x32xf32>
    tpu.vector_store %arg6[%c0_21, %c0_22, %c32], %12 {strides = array<i32>} : memref<2x16x224xf32, #tpu.memory_space<vmem>>, vector<2x16x32xf32>,
    %c0_23 = arith.constant 0 : index
    %c2 = arith.constant 2 : index
    %c0_24 = arith.constant 0 : index
    %14 = vector.load %arg5[%c0_23, %c2, %c0_24] : memref<2x22x32xf32, #tpu.memory_space<vmem>>, vector<2x16x32xf32>
    %c0_25 = arith.constant 0 : index
    %c0_26 = arith.constant 0 : index
    %c64 = arith.constant 64 : index
    %15 = vector.load %arg6[%c0_25, %c0_26, %c64] : memref<2x16x224xf32, #tpu.memory_space<vmem>>, vector<2x16x32xf32>
    tpu.vector_store %arg6[%c0_25, %c0_26, %c64], %14 {strides = array<i32>} : memref<2x16x224xf32, #tpu.memory_space<vmem>>, vector<2x16x32xf32>,
    %c0_27 = arith.constant 0 : index
    %c3_28 = arith.constant 3 : index
    %c0_29 = arith.constant 0 : index
    %16 = vector.load %arg5[%c0_27, %c3_28, %c0_29] : memref<2x22x32xf32, #tpu.memory_space<vmem>>, vector<2x16x32xf32>
    %c0_30 = arith.constant 0 : index
    %c0_31 = arith.constant 0 : index
    %c96 = arith.constant 96 : index
    %17 = vector.load %arg6[%c0_30, %c0_31, %c96] : memref<2x16x224xf32, #tpu.memory_space<vmem>>, vector<2x16x32xf32>
    tpu.vector_store %arg6[%c0_30, %c0_31, %c96], %16 {strides = array<i32>} : memref<2x16x224xf32, #tpu.memory_space<vmem>>, vector<2x16x32xf32>,
    %c0_32 = arith.constant 0 : index
    %c4 = arith.constant 4 : index
    %c0_33 = arith.constant 0 : index
    %18 = vector.load %arg5[%c0_32, %c4, %c0_33] : memref<2x22x32xf32, #tpu.memory_space<vmem>>, vector<2x16x32xf32>
    %c0_34 = arith.constant 0 : index
    %c0_35 = arith.constant 0 : index
    %c128 = arith.constant 128 : index
    %19 = vector.load %arg6[%c0_34, %c0_35, %c128] : memref<2x16x224xf32, #tpu.memory_space<vmem>>, vector<2x16x32xf32>
    tpu.vector_store %arg6[%c0_34, %c0_35, %c128], %18 {strides = array<i32>} : memref<2x16x224xf32, #tpu.memory_space<vmem>>, vector<2x16x32xf32>,
    %c0_36 = arith.constant 0 : index
    %c5 = arith.constant 5 : index
    %c0_37 = arith.constant 0 : index
    %20 = vector.load %arg5[%c0_36, %c5, %c0_37] : memref<2x22x32xf32, #tpu.memory_space<vmem>>, vector<2x16x32xf32>
    %c0_38 = arith.constant 0 : index
    %c0_39 = arith.constant 0 : index
    %c160 = arith.constant 160 : index
    %21 = vector.load %arg6[%c0_38, %c0_39, %c160] : memref<2x16x224xf32, #tpu.memory_space<vmem>>, vector<2x16x32xf32>
    tpu.vector_store %arg6[%c0_38, %c0_39, %c160], %20 {strides = array<i32>} : memref<2x16x224xf32, #tpu.memory_space<vmem>>, vector<2x16x32xf32>,
    %c0_40 = arith.constant 0 : index
    %c6 = arith.constant 6 : index
    %c0_41 = arith.constant 0 : index
    %22 = vector.load %arg5[%c0_40, %c6, %c0_41] : memref<2x22x32xf32, #tpu.memory_space<vmem>>, vector<2x16x32xf32>
    %c0_42 = arith.constant 0 : index
    %c0_43 = arith.constant 0 : index
    %c192 = arith.constant 192 : index
    %23 = vector.load %arg6[%c0_42, %c0_43, %c192] : memref<2x16x224xf32, #tpu.memory_space<vmem>>, vector<2x16x32xf32>
    tpu.vector_store %arg6[%c0_42, %c0_43, %c192], %22 {strides = array<i32>} : memref<2x16x224xf32, #tpu.memory_space<vmem>>, vector<2x16x32xf32>,
    %c0_44 = arith.constant 0 : index
    %c0_45 = arith.constant 0 : index
    %c0_46 = arith.constant 0 : index
    %24 = vector.load %arg6[%c0_44, %c0_45, %c0_46] : memref<2x16x224xf32, #tpu.memory_space<vmem>>, vector<2x16x224xf32>
    %25 = vector.shape_cast %24 : vector<2x16x224xf32> to vector<32x224xf32>
    %c0_47 = arith.constant 0 : index
    %c0_48 = arith.constant 0 : index
    %26 = vector.load %arg2[%c0_47, %c0_48] : memref<224x16xf32, #tpu.memory_space<vmem>>, vector<224x16xf32>
    %cst_49 = arith.constant dense<0.000000e+00> : vector<32x16xf32>
    %27 = tpu.matmul %25, %26, %cst_49 {dimension_numbers = #tpu.dot_dimension_numbers<[1], [0], [0], [1], [0, 0, 1, 1], [], []>} : vector<32x224xf32>, vector<224x16xf32>, vector<32x16xf32> -> vector<32x16xf32>
    %c0_50 = arith.constant 0 : index
    %28 = memref.load %arg3[%c0_50] : memref<1xf32, #tpu.memory_space<smem>>
    %29 = vector.broadcast %28 : f32 to vector<32x16xf32>
    %30 = arith.addf %27, %29 : vector<32x16xf32>
    %31 = arith.negf %30 : vector<32x16xf32>
    %32 = math.exp %31 : vector<32x16xf32>
    %cst_51 = arith.constant 1.000000e+00 : f32
    %33 = vector.broadcast %cst_51 : f32 to vector<32x16xf32>
    %34 = arith.addf %33, %32 : vector<32x16xf32>
    %35 = arith.divf %33, %34 : vector<32x16xf32>
    %c0_52 = arith.constant 0 : index
    %c0_53 = arith.constant 0 : index
    %36 = vector.load %arg4[%c0_52, %c0_53] : memref<32x16xf32, #tpu.memory_space<vmem>>, vector<32x16xf32>
    tpu.vector_store %arg4[%c0_52, %c0_53], %35 {strides = array<i32>} : memref<32x16xf32, #tpu.memory_space<vmem>>, vector<32x16xf32>,
    return
  }
  func.func @transform_0(%arg0: i32) -> (i32, i32, i32, i32) {
    %c0_i32 = arith.constant 0 : i32
    %c0_i32_0 = arith.constant 0 : i32
    %c0_i32_1 = arith.constant 0 : i32
    %c0_i32_2 = arith.constant 0 : i32
    return %arg0, %c0_i32, %c0_i32_0, %c0_i32_1 : i32, i32, i32, i32
  }
  func.func @transform_1(%arg0: i32) -> (i32, i32) {
    %c0_i32 = arith.constant 0 : i32
    %c0_i32_0 = arith.constant 0 : i32
    %c0_i32_1 = arith.constant 0 : i32
    return %c0_i32, %c0_i32_0 : i32, i32
  }
  func.func @transform_2(%arg0: i32) -> i32 {
    %c0_i32 = arith.constant 0 : i32
    %c0_i32_0 = arith.constant 0 : i32
    return %c0_i32 : i32
  }
  func.func @transform_3(%arg0: i32) -> (i32, i32) {
    %c0_i32 = arith.constant 0 : i32
    %c0_i32_0 = arith.constant 0 : i32
    return %arg0, %c0_i32 : i32, i32
  }
}

</mosaic_0001>

<bundles_post_ra>
// kernel: spatial_attention.1
= control target key start
LH: loop header
LB: loop body
LE: loop exit
PB: predicated region body
PF: predicated region fallthrough
CT: control target
= control target key end

     0   :  { %vm80_vm0 = vcmask 130048   ;;  %s1442_s0 = inlined_call_operand.vmem [shape: f32[2,16,16,16], index: 0, kind: input, shape index: {}]   ;;  %s1443_s1 = inlined_call_operand.vmem [shape: f32[224,16], index: 1, kind: input, shape index: {}]   ;;  %s1444_s2 = inlined_call_operand.<no memory space> [shape: f32[1], index: 2, kind: input, shape index: {}]   ;;  %s1445_s3 = inlined_call_operand.hbm [shape: f32[32,16], index: 3, kind: output, shape index: {}]  }
   0x1   :  { %v48_v0 = vld [vmem:[%s1442_s0 + $0x100] sm:$0xff]  ;;  %v50_v1 = vld [vmem:[%s1442_s0 + $0x110] sm:$0xff] }
   0x2   :  { %v52_v2 = vld [vmem:[%s1442_s0 + $0x120] sm:$0xff]  ;;  %v272_v3 = vsel %vm80_vm0, %v48_v0, -inf  ;;  %v54_v4 = vld [vmem:[%s1442_s0 + $0x130] sm:$0xff]  ;;  %v273_v5 = vsel %vm80_vm0, %v50_v1, -inf  ;;  %v144_v11 = vsel %vm80_vm0, %v50_v1, 0.0  ;;  %v143_v17 = vsel %vm80_vm0, %v48_v0, 0.0 }
   0x3   :  { %v56_v6 = vld [vmem:[%s1442_s0 + $0x140] sm:$0xff]  ;;  %v274_v7 = vmax.f32 %v272_v3, %v273_v5  ;;  %v275_v8 = vsel %vm80_vm0, %v52_v2, -inf  ;;  %v277_v9 = vsel %vm80_vm0, %v54_v4, -inf  ;;  %v58_v10 = vld [vmem:[%s1442_s0 + $0x150] sm:$0xff]  ;;  %v146_v15 = vsel %vm80_vm0, %v52_v2, 0.0 }
   0x4   :  { %v279_v13 = vsel %vm80_vm0, %v56_v6, -inf  ;;  %v60_v14 = vld [vmem:[%s1442_s0 + $0x160] sm:$0xff]  ;;  %v281_v18 = vsel %vm80_vm0, %v58_v10, -inf  ;;  %v145_v19 = vadd.f32 %v144_v11, %v143_v17  ;;  %v62_v20 = vld [vmem:[%s1442_s0 + $0x170] sm:$0xff]  ;;  %v148_v21 = vsel %vm80_vm0, %v54_v4, 0.0 }
   0x5   :  { %v276_v12 = vmax.f32 %v274_v7, %v275_v8  ;;  %v16_v23 = vld [vmem:[%s1442_s0] sm:$0xff]  ;;  %v283_v24 = vsel %vm80_vm0, %v60_v14, -inf  ;;  %v18_v26 = vld [vmem:[%s1442_s0 + $0x10] sm:$0xff]  ;;  %v150_v29 = vsel %vm80_vm0, %v56_v6, 0.0  ;;  %v152_v30 = vsel %vm80_vm0, %v58_v10, 0.0 }
   0x6   :  { %v147_v25 = vadd.f32 %v146_v15, %v145_v19  ;;  %v20_v27 = vld [vmem:[%s1442_s0 + $0x20] sm:$0xff]  ;;  %v154_v31 = vsel %vm80_vm0, %v60_v14, 0.0  ;;  %v156_v33 = vsel %vm80_vm0, %v62_v20, 0.0  ;;  %v285_v34 = vsel %vm80_vm0, %v62_v20, -inf  ;;  %v22_v36 = vld [vmem:[%s1442_s0 + $0x30] sm:$0xff] }
   0x7   :  { %v278_v16 = vmax.f32 %v276_v12, %v277_v9  ;;  %v64_v28 = vld [vmem:[%s1442_s0 + $0x180] sm:$0xff]  ;;  %v210_v37 = vsel %vm80_vm0, %v16_v23, -inf  ;;  %v66_v38 = vld [vmem:[%s1442_s0 + $0x190] sm:$0xff]  ;;  %v211_v41 = vsel %vm80_vm0, %v18_v26, -inf  ;;  %v213_v42 = vsel %vm80_vm0, %v20_v27, -inf }
   0x8   :  { %v149_v35 = vadd.f32 %v148_v21, %v147_v25  ;;  %v158_v39 = vsel %vm80_vm0, %v64_v28, 0.0  ;;  %v68_v43 = vld [vmem:[%s1442_s0 + $0x1a0] sm:$0xff]  ;;  %v70_v44 = vld [vmem:[%s1442_s0 + $0x1b0] sm:$0xff]  ;;  %v160_v45 = vsel %vm80_vm0, %v66_v38, 0.0  ;;  %v287_v46 = vsel %vm80_vm0, %v64_v28, -inf }
   0x9   :  { %v280_v22 = vmax.f32 %v278_v16, %v279_v13  ;;  %v24_v48 = vld [vmem:[%s1442_s0 + $0x40] sm:$0xff]  ;;  %v212_v49 = vmax.f32 %v210_v37, %v211_v41  ;;  %v162_v51 = vsel %vm80_vm0, %v68_v43, 0.0  ;;  %v917_v52 = vsel %vm80_vm0, %v70_v44, 0.0  ;;  %v74_v55 = vld [vmem:[%s1442_s0 + $0x1d0] sm:$0xff] }
   0xa   :  { %v151_v47 = vadd.f32 %v150_v29, %v149_v35  ;;  %v72_v50 = vld [vmem:[%s1442_s0 + $0x1c0] sm:$0xff]  ;;  %v215_v54 = vsel %vm80_vm0, %v22_v36, -inf  ;;  %v289_v57 = vsel %vm80_vm0, %v66_v38, -inf  ;;  %v26_v59 = vld [vmem:[%s1442_s0 + $0x50] sm:$0xff]  ;;  %v934_v62 = vsel %vm80_vm0, %v74_v55, 0.0 }
   0xb   :  { %v282_v32 = vmax.f32 %v280_v22, %v281_v18  ;;  %v924_v56 = vsel %vm80_vm0, %v72_v50, 0.0  ;;  %v214_v60 = vmax.f32 %v212_v49, %v213_v42  ;;  %v76_v61 = vld [vmem:[%s1442_s0 + $0x1e0] sm:$0xff]  ;;  %v82_v0 = vsel %vm80_vm0, %v18_v26, 0.0 }
   0xc   :  { %v153_v58 = vadd.f32 %v152_v30, %v151_v47  ;;  %v217_v1 = vsel %vm80_vm0, %v24_v48, -inf  ;;  %v939_v2 = vsel %vm80_vm0, %v76_v61, 0.0  ;;  %v291_v3 = vsel %vm80_vm0, %v68_v43, -inf  ;;  %v28_v5 = vld [vmem:[%s1442_s0 + $0x60] sm:$0xff] }
   0xd   :  { %v284_v40 = vmax.f32 %v282_v32, %v283_v24  ;;  %v216_v6 = vmax.f32 %v214_v60, %v215_v54  ;;  %v84_v8 = vsel %vm80_vm0, %v20_v27, 0.0  ;;  %v219_v9 = vsel %vm80_vm0, %v26_v59, -inf }
   0xe   :  { %v155_v4 = vadd.f32 %v154_v31, %v153_v58  ;;  %v81_v10 = vsel %vm80_vm0, %v16_v23, 0.0 }
   0xf   :  { %v286_v53 = vmax.f32 %v284_v40, %v285_v34 }
  0x11   :  { %v288_v63 = vmax.f32 %v286_v53, %v287_v46 }
  0x13   :  { %v290_v7 = vmax.f32 %v288_v63, %v289_v57 }
  0x14   :  { %9 = vsyncpa [#allocation6], 0  ;;  %v293_v11 = vsel %vm80_vm0, %v70_v44, -inf  ;;  %v157_v12 = vadd.f32 %v156_v33, %v155_v4  ;;  %v30_v13 = vld [vmem:[%s1442_s0 + $0x70] sm:$0xff]  ;;  %v218_v14 = vmax.f32 %v216_v6, %v217_v1  ;;  %v83_v15 = vadd.f32 %v82_v0, %v81_v10  ;;  %v32_v23 = vld [vmem:[%s1442_s0 + $0x80] sm:$0xff]  ;;  %s810_s5 = smov 16  }
  0x15   :  { %v78_v16 = vld [vmem:[%s1442_s0 + $0x1f0] sm:$0xff]  ;;  %v292_v17 = vmax.f32 %v290_v7, %v291_v3  ;;  %v295_v18 = vsel %vm80_vm0, %v72_v50, -inf  ;;  %v86_v19 = vsel %vm80_vm0, %v22_v36, 0.0  ;;  %v221_v20 = vsel %vm80_vm0, %v28_v5, -inf  ;;  %v972_v35 = vld [vmem:[%s1442_s0 + $0x108] sm:$0xff]  ;;  %v977_v36 = vld [vmem:[%s1442_s0 + $0x118] sm:$0xff] }
  0x16   :  { %v297_v21 = vsel %vm80_vm0, %v74_v55, -inf  ;;  %v159_v22 = vadd.f32 %v158_v39, %v157_v12  ;;  %v220_v24 = vmax.f32 %v218_v14, %v219_v9  ;;  %v85_v25 = vadd.f32 %v84_v8, %v83_v15  ;;  %v34_v32 = vld [vmem:[%s1442_s0 + $0x90] sm:$0xff]  ;;  %v36_v42 = vld [vmem:[%s1442_s0 + $0xa0] sm:$0xff]  ;;  %v989_v46 = vld [vmem:[%s1442_s0 + $0x128] sm:$0xff]  ;;  %s813_s14 = smov 32   ;;  %s814_s19 = smov 64  }
  0x17   :  { %v294_v26 = vmax.f32 %v292_v17, %v293_v11  ;;  %v299_v27 = vsel %vm80_vm0, %v76_v61, -inf  ;;  %v88_v28 = vsel %vm80_vm0, %v24_v48, 0.0  ;;  %v223_v29 = vsel %vm80_vm0, %v30_v13, -inf  ;;  %v994_v47 = vld [vmem:[%s1442_s0 + $0x138] sm:$0xff]  ;;  %v38_v54 = vld [vmem:[%s1442_s0 + $0xb0] sm:$0xff]  ;;  %v1008_v58 = vld [vmem:[%s1442_s0 + $0x148] sm:$0xff] }
  0x18   :  { %v301_v30 = vsel %vm80_vm0, %v78_v16, -inf  ;;  %v161_v31 = vadd.f32 %v160_v45, %v159_v22  ;;  %v222_v33 = vmax.f32 %v220_v24, %v221_v20  ;;  %v87_v34 = vadd.f32 %v86_v19, %v85_v25  ;;  %v40_v1 = vld [vmem:[%s1442_s0 + $0xc0] sm:$0xff]  ;;  %v42_v11 = vld [vmem:[%s1442_s0 + $0xd0] sm:$0xff]  ;;  %v1035_v14 = vld [vmem:[%s1442_s0 + $0x168] sm:$0xff]  ;;  %s815_s28 = smov 96  }
  0x19   :  { %v296_v37 = vmax.f32 %v294_v26, %v295_v18  ;;  %v90_v38 = vsel %vm80_vm0, %v26_v59, 0.0  ;;  %v92_v39 = vsel %vm80_vm0, %v28_v5, 0.0  ;;  %v225_v40 = vsel %vm80_vm0, %v32_v23, -inf  ;;  %v1022_v5 = vld [vmem:[%s1442_s0 + $0x158] sm:$0xff] }
  0x1a   :  { %v163_v41 = vadd.f32 %v162_v51, %v161_v31  ;;  %v94_v43 = vsel %vm80_vm0, %v30_v13, 0.0  ;;  %v224_v44 = vmax.f32 %v222_v33, %v223_v29  ;;  %v89_v45 = vadd.f32 %v88_v28, %v87_v34  ;;  %v46_v28 = vld [vmem:[%s1442_s0 + $0xf0] sm:$0xff]  ;;  %v1064_v31 = vld [vmem:[%s1442_s0 + $0x188] sm:$0xff] }
  0x1b   :  { %v298_v48 = vmax.f32 %v296_v37, %v297_v21  ;;  %v227_v49 = vsel %vm80_vm0, %v34_v32, -inf  ;;  %v303_v50 = vsel %vm80_vm0, %v972_v35, -inf  ;;  %v304_v51 = vsel %vm80_vm0, %v977_v36, -inf  ;;  %v44_v21 = vld [vmem:[%s1442_s0 + $0xe0] sm:$0xff] }
  0x1c   :  { %v165_v53 = vadd.f32 %v917_v52, %v163_v41  ;;  %v226_v55 = vmax.f32 %v224_v44, %v225_v40  ;;  %v91_v57 = vadd.f32 %v90_v38, %v89_v45  ;;  %v305_v59 = vmax.f32 %v303_v50, %v304_v51  ;;  %v1073_v40 = vld [vmem:[%s1442_s0 + $0x198] sm:$0xff]  ;;  %v17_v51 = vld [vmem:[%s1442_s0 + $0x8] sm:$0xff] }
  0x1d   :  { %v300_v60 = vmax.f32 %v298_v48, %v299_v27  ;;  %v229_v61 = vsel %vm80_vm0, %v36_v42, -inf  ;;  %v306_v63 = vsel %vm80_vm0, %v989_v46, -inf  ;;  %v308_v52 = vsel %vm80_vm0, %v994_v47, -inf }
  0x1e   :  { %v167_v0 = vadd.f32 %v924_v56, %v165_v53  ;;  %v228_v3 = vmax.f32 %v226_v55, %v227_v49  ;;  %v93_v4 = vadd.f32 %v92_v39, %v91_v57  ;;  %v307_v6 = vmax.f32 %v305_v59, %v306_v63  ;;  %v1082_v49 = vld [vmem:[%s1442_s0 + $0x1a8] sm:$0xff]  ;;  %v19_v53 = vld [vmem:[%s1442_s0 + $0x18] sm:$0xff] }
  0x1f   :  { %v302_v7 = vmax.f32 %v300_v60, %v301_v30  ;;  %v96_v8 = vsel %vm80_vm0, %v32_v23, 0.0  ;;  %v231_v9 = vsel %vm80_vm0, %v38_v54, -inf  ;;  %v310_v56 = vsel %vm80_vm0, %v1008_v58, -inf  ;;  %v21_v57 = vld [vmem:[%s1442_s0 + $0x28] sm:$0xff] }
  0x20   :  { %v169_v10 = vadd.f32 %v934_v62, %v167_v0  ;;  %v230_v12 = vmax.f32 %v228_v3, %v229_v61  ;;  %v95_v13 = vadd.f32 %v94_v43, %v93_v4  ;;  %v309_v15 = vmax.f32 %v307_v6, %v308_v52  ;;  %v1099_v61 = vld [vmem:[%s1442_s0 + $0x1b8] sm:$0xff] }
  0x21   :  { %v172_v17 = vsel %vm80_vm0, %v78_v16, 0.0  ;;  %342 = vrot.lane.b32.xlu1 %v302_v7, %s810_s5  ;;  %v98_v18 = vsel %vm80_vm0, %v34_v32, 0.0  ;;  %v233_v62 = vsel %vm80_vm0, %v40_v1, -inf  ;;  %v312_v19 = vsel %vm80_vm0, %v1022_v5, -inf  ;;  %v1050_v16 = vld [vmem:[%s1442_s0 + $0x178] sm:$0xff]  ;;  %v1113_v7 = vld [vmem:[%s1442_s0 + $0x1c8] sm:$0xff] }
  0x22   :  { %v171_v20 = vadd.f32 %v939_v2, %v169_v10  ;;  %v232_v22 = vmax.f32 %v230_v12, %v231_v9  ;;  %v97_v23 = vadd.f32 %v96_v8, %v95_v13  ;;  %v311_v24 = vmax.f32 %v309_v15, %v310_v56  ;;  %v23_v52 = vld [vmem:[%s1442_s0 + $0x38] sm:$0xff]  ;;  %v25_v9 = vld [vmem:[%s1442_s0 + $0x48] sm:$0xff] }
  0x23   :  { %v100_v25 = vsel %vm80_vm0, %v36_v42, 0.0  ;;  %v235_v26 = vsel %vm80_vm0, %v42_v11, -inf  ;;  %v314_v27 = vsel %vm80_vm0, %v1035_v14, -inf  ;;  %v102_v33 = vsel %vm80_vm0, %v38_v54, 0.0 }
  0x24   :  { %v1056_v2 = vadd.f32 %v172_v17, %v171_v20  ;;  %v234_v29 = vmax.f32 %v232_v22, %v233_v62  ;;  %v99_v30 = vadd.f32 %v98_v18, %v97_v23  ;;  %v313_v32 = vmax.f32 %v311_v24, %v312_v19  ;;  %v1128_v18 = vld [vmem:[%s1442_s0 + $0x1d8] sm:$0xff] }
  0x25   :  { %v237_v34 = vsel %vm80_vm0, %v44_v21, -inf  ;;  %v316_v37 = vsel %vm80_vm0, %v1050_v16, -inf  ;;  %v104_v42 = vsel %vm80_vm0, %v40_v1, 0.0  ;;  %v239_v43 = vsel %vm80_vm0, %v46_v28, -inf  ;;  %v27_v20 = vld [vmem:[%s1442_s0 + $0x58] sm:$0xff] }
  0x26   :  { %v236_v38 = vmax.f32 %v234_v29, %v235_v26  ;;  %v101_v39 = vadd.f32 %v100_v25, %v99_v30  ;;  %v315_v41 = vmax.f32 %v313_v32, %v314_v27  ;;  %v318_v44 = vsel %vm80_vm0, %v1064_v31, -inf }
  0x27   :  { %v106_v54 = vsel %vm80_vm0, %v42_v11, 0.0  ;;  %v320_v55 = vsel %vm80_vm0, %v1073_v40, -inf  ;;  %v108_v0 = vsel %vm80_vm0, %v44_v21, 0.0  ;;  %v322_v1 = vsel %vm80_vm0, %v1082_v49, -inf }
  0x28   :  { %v238_v45 = vmax.f32 %v236_v38, %v237_v34  ;;  %v103_v48 = vadd.f32 %v102_v33, %v101_v39  ;;  %v317_v50 = vmax.f32 %v315_v41, %v316_v37  ;;  %v241_v3 = vsel %vm80_vm0, %v17_v51, -inf  ;;  %v1159_v37 = vld [vmem:[%s1442_s0 + $0x1f8] sm:$0xff] }
  0x29   :  { %v242_v4 = vsel %vm80_vm0, %v19_v53, -inf  ;;  %v244_v10 = vsel %vm80_vm0, %v21_v57, -inf  ;;  %v110_v11 = vsel %vm80_vm0, %v46_v28, 0.0  ;;  %v174_v12 = vsel %vm80_vm0, %v972_v35, 0.0  ;;  %v29_v28 = vld [vmem:[%s1442_s0 + $0x68] sm:$0xff]  ;;  %v31_v39 = vld [vmem:[%s1442_s0 + $0x78] sm:$0xff] }
  0x2a   :  { %v240_v59 = vmax.f32 %v238_v45, %v239_v43  ;;  %v105_v60 = vadd.f32 %v104_v42, %v103_v48  ;;  %v319_v63 = vmax.f32 %v317_v50, %v318_v44  ;;  %v243_v56 = vmax.f32 %v241_v3, %v242_v4 }
  0x2b   :  { %v324_v13 = vsel %vm80_vm0, %v1099_v61, -inf  ;;  %v246_v15 = vsel %vm80_vm0, %v23_v52, -inf  ;;  %v175_v62 = vsel %vm80_vm0, %v977_v36, 0.0  ;;  %v326_v21 = vsel %vm80_vm0, %v1113_v7, -inf  ;;  %v1145_v36 = vld [vmem:[%s1442_s0 + $0x1e8] sm:$0xff] }
  0x2c   :  { %338 = vrot.lane.b32.xlu0 %v240_v59, %s810_s5  ;;  %v107_v6 = vadd.f32 %v106_v54, %v105_v60  ;;  %v321_v8 = vmax.f32 %v319_v63, %v320_v55  ;;  %v245_v35 = vmax.f32 %v243_v56, %v244_v10  ;;  %v112_v22 = vsel %vm80_vm0, %v17_v51, 0.0 }
  0x2d   :  { %v113_v23 = vsel %vm80_vm0, %v19_v53, 0.0  ;;  %v248_v24 = vsel %vm80_vm0, %v25_v9, -inf  ;;  %v177_v26 = vsel %vm80_vm0, %v989_v46, 0.0  ;;  %v328_v30 = vsel %vm80_vm0, %v1128_v18, -inf }
  0x2e   :  { %v109_v17 = vadd.f32 %v108_v0, %v107_v6  ;;  %v323_v19 = vmax.f32 %v321_v8, %v322_v1  ;;  %v247_v29 = vmax.f32 %v245_v35, %v246_v15  ;;  %v115_v32 = vsel %vm80_vm0, %v21_v57, 0.0  ;;  %v39_v15 = vld [vmem:[%s1442_s0 + $0xb8] sm:$0xff] }
  0x2f   :  { %v250_v33 = vsel %vm80_vm0, %v27_v20, -inf  ;;  %v176_v34 = vadd.f32 %v175_v62, %v174_v12  ;;  %v179_v46 = vsel %vm80_vm0, %v994_v47, 0.0  ;;  %v114_v42 = vadd.f32 %v113_v23, %v112_v22  ;;  %v33_v47 = vld [vmem:[%s1442_s0 + $0x88] sm:$0xff] }
  0x30   :  { %v1140_v25 = vadd.f32 %v110_v11, %v109_v17  ;;  %v325_v27 = vmax.f32 %v323_v19, %v324_v13  ;;  %v249_v41 = vmax.f32 %v247_v29, %v248_v24  ;;  %v330_v43 = vsel %vm80_vm0, %v1145_v36, -inf  ;;  %v41_v22 = vld [vmem:[%s1442_s0 + $0xc8] sm:$0xff] }
  0x31   :  { %v117_v44 = vsel %vm80_vm0, %v23_v52, 0.0  ;;  %v252_v45 = vsel %vm80_vm0, %v29_v28, -inf  ;;  %v178_v48 = vadd.f32 %v177_v26, %v176_v34  ;;  %v181_v50 = vsel %vm80_vm0, %v1008_v58, 0.0  ;;  %v35_v58 = vld [vmem:[%s1442_s0 + $0x98] sm:$0xff] }
  0x32   :  { %v327_v38 = vmax.f32 %v325_v27, %v326_v21  ;;  %v251_v53 = vmax.f32 %v249_v41, %v250_v33  ;;  %v116_v54 = vadd.f32 %v115_v32, %v114_v42  ;;  %v332_v55 = vsel %vm80_vm0, %v1159_v37, -inf }
  0x33   :  { %v119_v57 = vsel %vm80_vm0, %v25_v9, 0.0  ;;  %v254_v59 = vsel %vm80_vm0, %v31_v39, -inf  ;;  %v180_v60 = vadd.f32 %v179_v46, %v178_v48  ;;  %v183_v63 = vsel %vm80_vm0, %v1022_v5, 0.0  ;;  %v37_v5 = vld [vmem:[%s1442_s0 + $0xa8] sm:$0xff]  ;;  %v47_v48 = vld [vmem:[%s1442_s0 + $0xf8] sm:$0xff] }
  0x34   :  { %v329_v51 = vmax.f32 %v327_v38, %v328_v30  ;;  %v253_v0 = vmax.f32 %v251_v53, %v252_v45  ;;  %v118_v1 = vadd.f32 %v117_v44, %v116_v54  ;;  %v185_v3 = vsel %vm80_vm0, %v1035_v14, 0.0  ;;  %v43_v30 = vld [vmem:[%s1442_s0 + $0xd8] sm:$0xff] }
  0x35   :  { %v121_v4 = vsel %vm80_vm0, %v27_v20, 0.0  ;;  %v256_v6 = vsel %vm80_vm0, %v33_v47, -inf  ;;  %v182_v8 = vadd.f32 %v181_v50, %v180_v60  ;;  %v123_v56 = vsel %vm80_vm0, %v29_v28, 0.0 }
  0x36   :  { %v331_v52 = vmax.f32 %v329_v51, %v330_v43  ;;  %v255_v10 = vmax.f32 %v253_v0, %v254_v59  ;;  %v120_v11 = vadd.f32 %v119_v57, %v118_v1  ;;  %v258_v12 = vsel %vm80_vm0, %v35_v58, -inf }
  0x37   :  { %v184_v13 = vadd.f32 %v183_v63, %v182_v8  ;;  %vm354_vm1 = vcmask 256000   ;;  %v187_v14 = vsel %vm80_vm0, %v1050_v16, 0.0  ;;  %v811_v19 = vmov 0.0  }
  0x38   :  { %v333_v9 = vmax.f32 %v331_v52, %v332_v55  ;;  %v257_v17 = vmax.f32 %v255_v10, %v256_v6  ;;  %v122_v62 = vadd.f32 %v121_v4, %v120_v11  ;;  %356 = vst.msk [vmem:[#allocation2 + $0x18] sm:$0x7] %vm354_vm1, %v811_v19  ;;  %355 = vst.msk [vmem:[#allocation2] sm:$0x7] %vm354_vm1, %v811_v19  ;;  %v125_v20 = vsel %vm80_vm0, %v31_v39, 0.0  ;;  %v45_v39 = vld [vmem:[%s1442_s0 + $0xe8] sm:$0xff] }
  0x39   :  { %357 = vst.msk [vmem:[#allocation2 + $0x13] sm:$0x7] %vm354_vm1, %v811_v19  ;;  %358 = vst.msk [vmem:[#allocation2 + $0x2b] sm:$0x7] %vm354_vm1, %v811_v19  ;;  %v260_v35 = vsel %vm80_vm0, %v37_v5, -inf  ;;  %v186_v21 = vadd.f32 %v185_v3, %v184_v13  ;;  %v189_v16 = vsel %vm80_vm0, %v1064_v31, 0.0 }
  0x3a   :  { %344 = vrot.lane.b32.xlu1 %v333_v9, %s810_s5  ;;  %v259_v23 = vmax.f32 %v257_v17, %v258_v12  ;;  %v124_v24 = vadd.f32 %v123_v56, %v122_v62  ;;  %v127_v26 = vsel %vm80_vm0, %v33_v47, 0.0  ;;  %v262_v27 = vsel %vm80_vm0, %v39_v15, -inf  ;;  %v512_v13 = vld [vmem:[%s1443_s1 + $0x8] sm:$0xff]  ;;  %v514_v17 = vld [vmem:[%s1443_s1 + $0x18] sm:$0xff]  ;;  %v515_v19 = vld [vmem:[%s1443_s1 + $0x20] sm:$0xff] }
  0x3b   :  { %v188_v28 = vadd.f32 %v187_v14, %v186_v21  ;;  %v191_v29 = vsel %vm80_vm0, %v1073_v40, 0.0  ;;  %v129_v33 = vsel %vm80_vm0, %v35_v58, 0.0  ;;  %v264_v34 = vsel %vm80_vm0, %v41_v22, -inf  ;;  %v517_v21 = vld [vmem:[%s1443_s1 + $0x30] sm:$0xff] }
  0x3c   :  { %v261_v32 = vmax.f32 %v259_v23, %v260_v35  ;;  %v126_v31 = vadd.f32 %v125_v20, %v124_v24  ;;  %v193_v38 = vsel %vm80_vm0, %v1082_v49, 0.0  ;;  %v131_v42 = vsel %vm80_vm0, %v37_v5, 0.0  ;;  %v516_v20 = vld [vmem:[%s1443_s1 + $0x28] sm:$0xff]  ;;  %v519_v23 = vld [vmem:[%s1443_s1 + $0x40] sm:$0xff] }
  0x3d   :  { %v190_v46 = vadd.f32 %v189_v16, %v188_v28  ;;  %v266_v43 = vsel %vm80_vm0, %v43_v30, -inf  ;;  %v195_v45 = vsel %vm80_vm0, %v1099_v61, 0.0  ;;  %v133_v51 = vsel %vm80_vm0, %v39_v15, 0.0  ;;  %v518_v16 = vld [vmem:[%s1443_s1 + $0x38] sm:$0xff]  ;;  %v520_v24 = vld [vmem:[%s1443_s1 + $0x48] sm:$0xff] }
  0x3e   :  { %v263_v41 = vmax.f32 %v261_v32, %v262_v27  ;;  %v128_v40 = vadd.f32 %v127_v26, %v126_v31  ;;  %v268_v47 = vsel %vm80_vm0, %v45_v39, -inf  ;;  %v197_v54 = vsel %vm80_vm0, %v1113_v7, 0.0  ;;  %v521_v27 = vld [vmem:[%s1443_s1 + $0x50] sm:$0xff]  ;;  %v522_v28 = vld [vmem:[%s1443_s1 + $0x58] sm:$0xff]  ;;  %v524_v32 = vld [vmem:[%s1443_s1 + $0x68] sm:$0xff] }
  0x3f   :  { %v192_v44 = vadd.f32 %v191_v29, %v190_v46  ;;  %v135_v59 = vsel %vm80_vm0, %v41_v22, 0.0  ;;  %v270_v61 = vsel %vm80_vm0, %v47_v48, -inf  ;;  %v199_v63 = vsel %vm80_vm0, %v1128_v18, 0.0 }
  0x40   :  { %v265_v50 = vmax.f32 %v263_v41, %v264_v34  ;;  %v130_v49 = vadd.f32 %v129_v33, %v128_v40  ;;  %v137_v0 = vsel %vm80_vm0, %v43_v30, 0.0  ;;  %v201_v3 = vsel %vm80_vm0, %v1145_v36, 0.0  ;;  %v511_v36 = vld [vmem:[%s1443_s1] sm:$0xff]  ;;  %v525_v33 = vld [vmem:[%s1443_s1 + $0x70] sm:$0xff]  ;;  %v526_v34 = vld [vmem:[%s1443_s1 + $0x78] sm:$0xff] }
  0x41   :  { %v194_v53 = vadd.f32 %v193_v38, %v192_v44  ;;  %v139_v6 = vsel %vm80_vm0, %v45_v39, 0.0  ;;  %v203_v9 = vsel %vm80_vm0, %v1159_v37, 0.0  ;;  %v141_v18 = vsel %vm80_vm0, %v47_v48, 0.0  ;;  %v513_v37 = vld [vmem:[%s1443_s1 + $0x10] sm:$0xff]  ;;  %v523_v30 = vld [vmem:[%s1443_s1 + $0x60] sm:$0xff] }
  0x42   :  { %v267_v55 = vmax.f32 %v265_v50, %v266_v43  ;;  %v132_v57 = vadd.f32 %v131_v42, %v130_v49  ;;  %v812_v14 = vmov 0.0|0.0   ;;  %v692_v15 = vpack.c.bf16 %v512_v13, %v511_v36  ;;  %v527_v42 = vld [vmem:[%s1443_s1 + $0x80] sm:$0xff]  ;;  %v528_v43 = vld [vmem:[%s1443_s1 + $0x88] sm:$0xff] }
  0x43   :  { %v196_v60 = vadd.f32 %v195_v45, %v194_v53  ;;  %691 = vmatprep.subr.bf16.mxu0 %v812_v14  ;;  %733 = vmatprep.subr.bf16.mxu1 %v812_v14  ;;  %v695_v62 = vpack.c.bf16 %v514_v17, %v513_v37  ;;  %v698_v35 = vpack.c.bf16 %v516_v20, %v515_v19  ;;  %v208_v38 = vmul.f32 0.0625, %v1056_v2  ;;  %v535_v36 = vld [vmem:[%s1443_s1 + $0xc0] sm:$0xff]  ;;  %v536_v13 = vld [vmem:[%s1443_s1 + $0xc8] sm:$0xff]  ;;  %v537_v19 = vld [vmem:[%s1443_s1 + $0xd0] sm:$0xff] }
  0x44   :  { %v269_v52 = vmax.f32 %v267_v55, %v268_v47  ;;  %v134_v58 = vadd.f32 %v133_v51, %v132_v57  ;;  %693 = vmatpush1.bf16.msra.mxu0 %v692_v15  ;;  %747 = vmatpush1.bf16.msra.mxu1 %v692_v15  ;;  %v701_v22 = vpack.c.bf16 %v518_v16, %v517_v21  ;;  %vm359_vm2 = vcmask 261120   ;;  %v538_v20 = vld [vmem:[%s1443_s1 + $0xd8] sm:$0xff] }
  0x45   :  { %v198_v1 = vadd.f32 %v197_v54, %v196_v60  ;;  %694 = vmatprep.subr.bf16.mxu0 %v812_v14  ;;  %734 = vmatprep.subr.bf16.mxu1 %v812_v14  ;;  %v704_v26 = vpack.c.bf16 %v520_v24, %v519_v23  ;;  %v707_v29 = vpack.c.bf16 %v522_v28, %v521_v27  ;;  %v206_v40 = vmul.f32 0.0625, %v1140_v25 }
  0x46   :  { %v271_v4 = vmax.f32 %v269_v52, %v270_v61  ;;  %v136_v7 = vadd.f32 %v135_v59, %v134_v58  ;;  %v710_v31 = vpack.c.bf16 %v524_v32, %v523_v30  ;;  %v713_v46 = vpack.c.bf16 %v526_v34, %v525_v33  ;;  %v530_v52 = vld [vmem:[%s1443_s1 + $0x98] sm:$0xff] }
  0x47   :  { %v200_v8 = vadd.f32 %v199_v63, %v198_v1  ;;  %v716_v45 = vpack.c.bf16 %v528_v43, %v527_v42  ;;  %v529_v63 = vld [vmem:[%s1443_s1 + $0x90] sm:$0xff]  ;;  %vm392_vm3 = vcmask 523520   ;;  %vm417_vm4 = vcmask 785920  }
  0x48   :  { %340 = vrot.lane.b32.xlu0 %v271_v4, %s810_s5  ;;  %v138_v5 = vadd.f32 %v137_v0, %v136_v7  ;;  %696 = vmatpush1.bf16.msra.mxu0 %v695_v62  ;;  %v719_v58 = vpack.c.bf16 %v530_v52, %v529_v63  ;;  %v531_v4 = vld [vmem:[%s1443_s1 + $0xa0] sm:$0xff]  ;;  %v532_v7 = vld [vmem:[%s1443_s1 + $0xa8] sm:$0xff]  ;;  %vm442_vm5 = vcmask 1048320   ;;  %vm541_vm6 = vcmask 785408  }
  0x49   :  { %v202_v56 = vadd.f32 %v201_v3, %v200_v8  ;;  %748 = vmatpush1.bf16.msra.mxu1 %v695_v62  ;;  %697 = vmatprep.subr.bf16.mxu0 %v812_v14  ;;  %v728_v62 = vpack.c.bf16 %v536_v13, %v535_v36  ;;  %v540_v63 = vstv %s1444_s2  ;;  %s816_s2 = smov [#allocation5]  }
  0x4a   :  { %v140_v10 = vadd.f32 %v139_v6, %v138_v5  ;;  %735 = vmatprep.subr.bf16.mxu1 %v812_v14  ;;  %v722_v6 = vpack.c.bf16 %v532_v7, %v531_v4  ;;  %v534_v5 = vld [vmem:[%s1443_s1 + $0xb8] sm:$0xff]  ;;  %s672_s11 = sshll.u32 %s816_s2, 4  ;;  %s673_s11 = int_to_ptr.vmem [resolvable:$true] %s672_s11 }
  0x4b   :  { %v1243_v11 = vadd.f32 %v203_v9, %v202_v56  ;;  %v533_v9 = vld [vmem:[%s1443_s1 + $0xb0] sm:$0xff]  ;;  %s786_s12 = scalar_lea.vmem %s673_s11, 512  ;;  %p791_p1 = scmp.lt.s32.totalorder %s673_s11, %s673_s11 }
  0x4c   :  { %v1245_v12 = vadd.f32 %v141_v18, %v140_v10  ;;  %699 = vmatpush1.bf16.msra.mxu0 %v698_v35  ;;  %v725_v18 = vpack.c.bf16 %v534_v5, %v533_v9  ;;  %p787_p0 = scmp.ne.s32.totalorder %s673_s11, %s786_s12  ;;  %p792_p2 = scmp.lt.s32.totalorder %s786_s12, %s786_s12 }
  0x4d   :  { %749 = vmatpush1.bf16.msra.mxu1 %v698_v35  ;;  %700 = vmatprep.subr.bf16.mxu0 %v812_v14  ;;  %v209_v51 = vmul.f32 0.0625, %v1243_v11  ;;  %v731_v35 = vpack.c.bf16 %v538_v20, %v537_v19 }
  0x4e   :  { %736 = vmatprep.subr.bf16.mxu1 %v812_v14  ;;  %v207_v61 = vmul.f32 0.0625, %v1245_v12  ;;  %p793_p3 = por %p792_p2, %p791_p1 }
  0x50   :  { %702 = vmatpush1.bf16.msra.mxu0 %v701_v22  ;;  %p794_p4 = pnand %p793_p3, %p787_p0 }
  0x51   :  { %750 = vmatpush1.bf16.msra.mxu1 %v701_v22  ;;  %703 = vmatprep.subr.bf16.mxu0 %v812_v14 }
  0x52   :  { %737 = vmatprep.subr.bf16.mxu1 %v812_v14 }
  0x54   :  { %705 = vmatpush1.bf16.msra.mxu0 %v704_v26 }
  0x55   :  { %751 = vmatpush1.bf16.msra.mxu1 %v704_v26  ;;  %706 = vmatprep.subr.bf16.mxu0 %v812_v14 }
  0x56   :  { %738 = vmatprep.subr.bf16.mxu1 %v812_v14 }
  0x58   :  { %708 = vmatpush1.bf16.msra.mxu0 %v707_v29 }
  0x59   :  { %752 = vmatpush1.bf16.msra.mxu1 %v707_v29  ;;  %709 = vmatprep.subr.bf16.mxu0 %v812_v14 }
  0x5a   :  { %739 = vmatprep.subr.bf16.mxu1 %v812_v14 }
  0x5c   :  { %711 = vmatpush1.bf16.msra.mxu0 %v710_v31 }
  0x5d   :  { %753 = vmatpush1.bf16.msra.mxu1 %v710_v31  ;;  %712 = vmatprep.subr.bf16.mxu0 %v812_v14 }
  0x5e   :  { %740 = vmatprep.subr.bf16.mxu1 %v812_v14 }
  0x60   :  { %714 = vmatpush1.bf16.msra.mxu0 %v713_v46 }
  0x61   :  { %754 = vmatpush1.bf16.msra.mxu1 %v713_v46  ;;  %715 = vmatprep.subr.bf16.mxu0 %v812_v14 }
  0x62   :  { %741 = vmatprep.subr.bf16.mxu1 %v812_v14 }
  0x64   :  { %717 = vmatpush1.bf16.msra.mxu0 %v716_v45 }
  0x65   :  { %755 = vmatpush1.bf16.msra.mxu1 %v716_v45  ;;  %718 = vmatprep.subr.bf16.mxu0 %v812_v14 }
  0x66   :  { %742 = vmatprep.subr.bf16.mxu1 %v812_v14 }
  0x68   :  { %720 = vmatpush1.bf16.msra.mxu0 %v719_v58 }
  0x69   :  { %756 = vmatpush1.bf16.msra.mxu1 %v719_v58  ;;  %721 = vmatprep.subr.bf16.mxu0 %v812_v14 }
  0x6a   :  { %743 = vmatprep.subr.bf16.mxu1 %v812_v14 }
  0x6c   :  { %723 = vmatpush1.bf16.msra.mxu0 %v722_v6 }
  0x6d   :  { %757 = vmatpush1.bf16.msra.mxu1 %v722_v6  ;;  %724 = vmatprep.subr.bf16.mxu0 %v812_v14 }
  0x6e   :  { %744 = vmatprep.subr.bf16.mxu1 %v812_v14 }
  0x70   :  { %726 = vmatpush1.bf16.msra.mxu0 %v725_v18 }
  0x71   :  { %758 = vmatpush1.bf16.msra.mxu1 %v725_v18  ;;  %727 = vmatprep.subr.bf16.mxu0 %v812_v14 }
  0x72   :  { %745 = vmatprep.subr.bf16.mxu1 %v812_v14 }
  0x74   :  { %729 = vmatpush1.bf16.msra.mxu0 %v728_v62 }
  0x75   :  { %759 = vmatpush1.bf16.msra.mxu1 %v728_v62  ;;  %730 = vmatprep.subr.bf16.mxu0 %v812_v14 }
  0x76   :  { %746 = vmatprep.subr.bf16.mxu1 %v812_v14 }
  0x78   :  { %732 = vmatpush1.bf16.msra.mxu0 %v731_v35 }
  0x79   :  { %760 = vmatpush1.bf16.msra.mxu1 %v731_v35 }
  0x93   :  { %v343_v39 = vpop.permute.xlu1 %342 }
  0x94   :  { %v352_v41 = vsel %vm80_vm0, %v208_v38, %v343_v39 }
  0x95   :  { %362 = vst.msk [vmem:[#allocation2 + $0x1b] sm:$0xff] %vm359_vm2, %v352_v41 }
  0x9c   :  { %v374_v44 = vld [vmem:[#allocation2 + $0x19] sm:$0xff] }
  0x9d   :  { %384 = vrot.lane.b32.xlu1 %v374_v44, %s813_s14  ;;  %v366_v2 = vld [vmem:[#allocation2 + $0x18] sm:$0xff] }
  0x9e   :  { %v339_v48 = vpop.permute.xlu0 %338  ;;  %370 = vst.msk [vmem:[#allocation3 + $0x20] sm:$0xff] %vm359_vm2, %v366_v2  ;;  %v399_v60 = vld [vmem:[#allocation2 + $0x1a] sm:$0xff] }
  0x9f   :  { %v350_v25 = vsel %vm80_vm0, %v206_v40, %v339_v48  ;;  %v424_v8 = vld [vmem:[#allocation2 + $0x1b] sm:$0xff] }
  0xa0   :  { %360 = vst.msk [vmem:[#allocation2 + $0x3] sm:$0xff] %vm359_vm2, %v350_v25 }
  0xa7   :  { %v372_v50 = vld [vmem:[#allocation2 + $0x1] sm:$0xff] }
  0xa8   :  { %380 = vrot.lane.b32.xlu0 %v372_v50, %s813_s14  ;;  %v364_v49 = vld [vmem:[#allocation2] sm:$0xff] }
  0xa9   :  { %368 = vst.msk [vmem:[#allocation3] sm:$0xff] %vm359_vm2, %v364_v49  ;;  %v397_v11 = vld [vmem:[#allocation2 + $0x2] sm:$0xff] }
  0xaa   :  { %v422_v22 = vld [vmem:[#allocation2 + $0x3] sm:$0xff] }
  0xac   :  { %v345_v47 = vpop.permute.xlu1 %344 }
  0xad   :  { %v353_v53 = vsel %vm80_vm0, %v209_v51, %v345_v47 }
  0xae   :  { %363 = vst.msk [vmem:[#allocation2 + $0x23] sm:$0xff] %vm359_vm2, %v353_v53 }
  0xb5   :  { %v457_v54 = vld [vmem:[#allocation2 + $0x1d] sm:$0xff]  ;;  %v458_v17 = vld [vmem:[#allocation2 + $0x25] sm:$0xff] }
  0xb6   :  { %467 = vrot.lane.b32.xlu1 %v457_v54, %s813_s14  ;;  %v449_v55 = vld [vmem:[#allocation2 + $0x1c] sm:$0xff]  ;;  %v450_v59 = vld [vmem:[#allocation2 + $0x24] sm:$0xff] }
  0xb7   :  { %v367_v57 = vld [vmem:[#allocation2 + $0x20] sm:$0xff]  ;;  %453 = vst.msk [vmem:[#allocation3 + $0x28] sm:$0xff] %vm359_vm2, %v449_v55  ;;  %454 = vst.msk [vmem:[#allocation3 + $0x38] sm:$0xff] %vm359_vm2, %v450_v59 }
  0xb8   :  { %371 = vst.msk [vmem:[#allocation3 + $0x30] sm:$0xff] %vm359_vm2, %v367_v57  ;;  %v481_v3 = vld [vmem:[#allocation2 + $0x1e] sm:$0xff]  ;;  %v482_v23 = vld [vmem:[#allocation2 + $0x26] sm:$0xff] }
  0xb9   :  { %v375_v10 = vld [vmem:[#allocation2 + $0x21] sm:$0xff] }
  0xba   :  { %409 = vrot.lane.b32.xlu1 %v399_v60, %s814_s19  ;;  %v341_v0 = vpop.permute.xlu0 %340  ;;  %v400_v16 = vld [vmem:[#allocation2 + $0x22] sm:$0xff] }
  0xbb   :  { %v351_v1 = vsel %vm80_vm0, %v207_v61, %v341_v0  ;;  %v425_v26 = vld [vmem:[#allocation2 + $0x23] sm:$0xff] }
  0xbc   :  { %361 = vst.msk [vmem:[#allocation2 + $0xb] sm:$0xff] %vm359_vm2, %v351_v1 }
  0xbe   :  { %491 = vrot.lane.b32.xlu1 %v481_v3, %s814_s19 }
  0xc2   :  { %434 = vrot.lane.b32.xlu1 %v424_v8, %s815_s28 }
  0xc3   :  { %v455_v56 = vld [vmem:[#allocation2 + $0x5] sm:$0xff]  ;;  %v456_v14 = vld [vmem:[#allocation2 + $0xd] sm:$0xff] }
  0xc4   :  { %463 = vrot.lane.b32.xlu0 %v455_v56, %s813_s14  ;;  %v447_v12 = vld [vmem:[#allocation2 + $0x4] sm:$0xff]  ;;  %v448_v15 = vld [vmem:[#allocation2 + $0xc] sm:$0xff] }
  0xc5   :  { %451 = vst.msk [vmem:[#allocation3 + $0x8] sm:$0xff] %vm359_vm2, %v447_v12  ;;  %v365_v37 = vld [vmem:[#allocation2 + $0x8] sm:$0xff]  ;;  %452 = vst.msk [vmem:[#allocation3 + $0x18] sm:$0xff] %vm359_vm2, %v448_v15 }
  0xc6   :  { %386 = vrot.lane.b32.xlu1 %v375_v10, %s813_s14  ;;  %369 = vst.msk [vmem:[#allocation3 + $0x10] sm:$0xff] %vm359_vm2, %v365_v37  ;;  %v479_v21 = vld [vmem:[#allocation2 + $0x6] sm:$0xff]  ;;  %v480_v28 = vld [vmem:[#allocation2 + $0xe] sm:$0xff] }
  0xc7   :  { %v373_v24 = vld [vmem:[#allocation2 + $0x9] sm:$0xff] }
  0xc8   :  { %405 = vrot.lane.b32.xlu0 %v397_v11, %s814_s19  ;;  %v398_v27 = vld [vmem:[#allocation2 + $0xa] sm:$0xff] }
  0xc9   :  { %v423_v29 = vld [vmem:[#allocation2 + $0xb] sm:$0xff] }
  0xca   :  { %469 = vrot.lane.b32.xlu1 %v458_v17, %s813_s14 }
  0xcc   :  { %487 = vrot.lane.b32.xlu0 %v479_v21, %s814_s19 }
  0xce   :  { %411 = vrot.lane.b32.xlu1 %v400_v16, %s814_s19 }
  0xd0   :  { %430 = vrot.lane.b32.xlu0 %v422_v22, %s815_s28 }
  0xd2   :  { %493 = vrot.lane.b32.xlu1 %v482_v23, %s814_s19 }
  0xd4   :  { %382 = vrot.lane.b32.xlu0 %v373_v24, %s813_s14 }
  0xd6   :  { %436 = vrot.lane.b32.xlu1 %v425_v26, %s815_s28 }
  0xd8   :  { %465 = vrot.lane.b32.xlu0 %v456_v14, %s813_s14 }
  0xdc   :  { %407 = vrot.lane.b32.xlu0 %v398_v27, %s814_s19 }
  0xe0   :  { %489 = vrot.lane.b32.xlu0 %v480_v28, %s814_s19 }
  0xe4   :  { %432 = vrot.lane.b32.xlu0 %v423_v29, %s815_s28 }
 0x10f   :  { %v385_v30 = vpop.permute.xlu1 %384 }
 0x110   :  { %395 = vst.msk [vmem:[#allocation3 + $0x20] sm:$0xff] %vm392_vm3, %v385_v30 }
 0x11a   :  { %v381_v32 = vpop.permute.xlu0 %380 }
 0x11b   :  { %393 = vst.msk [vmem:[#allocation3] sm:$0xff] %vm392_vm3, %v381_v32 }
 0x128   :  { %v468_v31 = vpop.permute.xlu1 %467 }
 0x129   :  { %477 = vst.msk [vmem:[#allocation3 + $0x28] sm:$0xff] %vm392_vm3, %v468_v31 }
 0x12c   :  { %v410_v33 = vpop.permute.xlu1 %409 }
 0x12d   :  { %420 = vst.msk [vmem:[#allocation3 + $0x20] sm:$0xff] %vm417_vm4, %v410_v33 }
 0x130   :  { %v492_v34 = vpop.permute.xlu1 %491 }
 0x131   :  { %501 = vst.msk [vmem:[#allocation3 + $0x28] sm:$0xff] %vm417_vm4, %v492_v34 }
 0x134   :  { %v435_v46 = vpop.permute.xlu1 %434 }
 0x135   :  { %445 = vst.msk [vmem:[#allocation3 + $0x20] sm:$0xff] %vm442_vm5, %v435_v46 }
 0x136   :  { %v464_v38 = vpop.permute.xlu0 %463 }
 0x137   :  { %475 = vst.msk [vmem:[#allocation3 + $0x8] sm:$0xff] %vm392_vm3, %v464_v38 }
 0x138   :  { %v387_v39 = vpop.permute.xlu1 %386  ;;  %v508_v41 = vld [vmem:[#allocation3 + $0x28] sm:$0xff] }
 0x139   :  { %396 = vst.msk [vmem:[#allocation3 + $0x30] sm:$0xff] %vm392_vm3, %v387_v39  ;;  %685 = vmatprep.mubr.msk.f32.mxu1 %vm541_vm6, %v508_v41 }
 0x13a   :  { %v406_v40 = vpop.permute.xlu0 %405 }
 0x13b   :  { %418 = vst.msk [vmem:[#allocation3] sm:$0xff] %vm417_vm4, %v406_v40 }
 0x13c   :  { %v470_v42 = vpop.permute.xlu1 %469  ;;  %v507_v43 = vld [vmem:[#allocation3 + $0x20] sm:$0xff] }
 0x13d   :  { %478 = vst.msk [vmem:[#allocation3 + $0x38] sm:$0xff] %vm392_vm3, %v470_v42  ;;  %629 = vmatmul.mubr.f32.vlgmr.msra.gmra.mrb[0].mxu1 %v507_v43 }
 0x13e   :  { %v488_v44 = vpop.permute.xlu0 %487 }
 0x13f   :  { %499 = vst.msk [vmem:[#allocation3 + $0x8] sm:$0xff] %vm417_vm4, %v488_v44 }
 0x140   :  { %v412_v45 = vpop.permute.xlu1 %411 }
 0x141   :  { %421 = vst.msk [vmem:[#allocation3 + $0x30] sm:$0xff] %vm417_vm4, %v412_v45 }
 0x142   :  { %v431_v2 = vpop.permute.xlu0 %430 }
 0x143   :  { %443 = vst.msk [vmem:[#allocation3] sm:$0xff] %vm442_vm5, %v431_v2 }
 0x144   :  { %v494_v48 = vpop.permute.xlu1 %493 }
 0x145   :  { %502 = vst.msk [vmem:[#allocation3 + $0x38] sm:$0xff] %vm417_vm4, %v494_v48 }
 0x146   :  { %v383_v25 = vpop.permute.xlu0 %382  ;;  %v504_v50 = vld [vmem:[#allocation3 + $0x8] sm:$0xff] }
 0x147   :  { %394 = vst.msk [vmem:[#allocation3 + $0x10] sm:$0xff] %vm392_vm3, %v383_v25  ;;  %683 = vmatprep.mubr.msk.f32.mxu0 %vm541_vm6, %v504_v50 }
 0x148   :  { %v437_v49 = vpop.permute.xlu1 %436 }
 0x149   :  { %446 = vst.msk [vmem:[#allocation3 + $0x30] sm:$0xff] %vm442_vm5, %v437_v49 }
 0x14a   :  { %v466_v51 = vpop.permute.xlu0 %465  ;;  %v503_v47 = vld [vmem:[#allocation3] sm:$0xff] }
 0x14b   :  { %476 = vst.msk [vmem:[#allocation3 + $0x18] sm:$0xff] %vm392_vm3, %v466_v51  ;;  %619 = vmatmul.mubr.f32.vlgmr.msra.gmra.mrb[0].mxu0 %v503_v47 }
 0x14c   :  { %v510_v53 = vld [vmem:[#allocation3 + $0x38] sm:$0xff] }
 0x14d   :  { %686 = vmatprep.mubr.msk.f32.mxu1 %vm541_vm6, %v510_v53 }
 0x14e   :  { %v408_v54 = vpop.permute.xlu0 %407 }
 0x14f   :  { %419 = vst.msk [vmem:[#allocation3 + $0x10] sm:$0xff] %vm417_vm4, %v408_v54 }
 0x150   :  { %v509_v55 = vld [vmem:[#allocation3 + $0x30] sm:$0xff] }
 0x151   :  { %634 = vmatmul.mubr.f32.gmra.mrb[2].mxu1 %v509_v55 }
 0x152   :  { %v490_v57 = vpop.permute.xlu0 %489 }
 0x153   :  { %500 = vst.msk [vmem:[#allocation3 + $0x18] sm:$0xff] %vm417_vm4, %v490_v57 }
 0x156   :  { %v433_v59 = vpop.permute.xlu0 %432 }
 0x157   :  { %444 = vst.msk [vmem:[#allocation3 + $0x10] sm:$0xff] %vm442_vm5, %v433_v59 }
 0x15a   :  { %v506_v61 = vld [vmem:[#allocation3 + $0x18] sm:$0xff] }
 0x15b   :  { %684 = vmatprep.mubr.msk.f32.mxu0 %vm541_vm6, %v506_v61 }
 0x15e   :  { %v505_v60 = vld [vmem:[#allocation3 + $0x10] sm:$0xff] }
 0x15f   :  { %624 = vmatmul.mubr.f32.gmra.mrb[2].mxu0 %v505_v60 }
 0x210   :  { %v630_v52 = vpop.f32.mrb[0].mxu1 }
 0x211   :  { %v631_v58 = vadd.f32 %v630_v52, %v540_v63  ;;  %v632_v0 = vpop.f32.mrb[1].mxu1 }
 0x213   :  { %v689_v1 = vmul.f32 -1.442695, %v631_v58 }
 0x215   :  { %770 = vpow2.f32 %v689_v1 }
 0x21e   :  { %v620_v4 = vpop.f32.mrb[0].mxu0 }
 0x21f   :  { %v771_v3 = vpop.eup %770  ;;  %v621_v6 = vadd.f32 %v620_v4, %v540_v63  ;;  %v622_v8 = vpop.f32.mrb[1].mxu0 }
 0x220   :  { %v653_v7 = vadd.f32 1.0, %v771_v3 }
 0x221   :  { %v687_v9 = vmul.f32 -1.442695, %v621_v6 }
 0x222   :  { %772 = vrcp.f32 %v653_v7 }
 0x223   :  { %774 = vpow2.f32 %v687_v9 }
 0x224   :  { %v635_v5 = vpop.f32.mrb[2].mxu1 }
 0x225   :  { %v636_v18 = vadd.f32 %v635_v5, %v540_v63  ;;  %v637_v56 = vpop.f32.mrb[3].mxu1 }
 0x227   :  { %v690_v10 = vmul.f32 -1.442695, %v636_v18 }
 0x229   :  { %776 = vpow2.f32 %v690_v10 }
 0x22c   :  { %v773_v11 = vpop.eup %772 }
 0x22d   :  { %665 = vst.msk [vmem:[#allocation5 + $0x10] sm:$0xff] %vm80_vm0, %v773_v11  ;;  %v775_v12 = vpop.eup %774 }
 0x22e   :  { %v651_v36 = vadd.f32 1.0, %v775_v12 }
 0x230   :  { %778 = vrcp.f32 %v651_v36 }
 0x232   :  { %v625_v37 = vpop.f32.mrb[2].mxu0 }
 0x233   :  { %v777_v13 = vpop.eup %776  ;;  %v626_v17 = vadd.f32 %v625_v37, %v540_v63  ;;  %v627_v62 = vpop.f32.mrb[3].mxu0 }
 0x234   :  { %v654_v15 = vadd.f32 1.0, %v777_v13 }
 0x235   :  { %v688_v19 = vmul.f32 -1.442695, %v626_v17 }
 0x236   :  { %780 = vrcp.f32 %v654_v15 }
 0x237   :  { %782 = vpow2.f32 %v688_v19 }
 0x23a   :  { %v779_v20 = vpop.eup %778 }
 0x23b   :  { %663 = vst.msk [vmem:[#allocation5] sm:$0xff] %vm80_vm0, %v779_v20 }
 0x240   :  { %v781_v35 = vpop.eup %780 }
 0x241   :  { %666 = vst.msk [vmem:[#allocation5 + $0x18] sm:$0xff] %vm80_vm0, %v781_v35  ;;  %v783_v21 = vpop.eup %782 }
 0x242   :  { %v652_v16 = vadd.f32 1.0, %v783_v21 }
 0x244   :  { %784 = vrcp.f32 %v652_v16 }
 0x24e   :  { %v785_v22 = vpop.eup %784 }
 0x24f   :  { %664 = vst.msk [vmem:[#allocation5 + $0x8] sm:$0xff] %vm80_vm0, %v785_v22 }
 0x250   :  { %797 = shalt.err (!%p794_p4)
}
 0x251   :  { %s798_s14 = scalar_lea.hbm %s1445_s3, 512 }
 0x252   :  { %p799_p5 = scmp.ne.s32.totalorder %s1445_s3, %s798_s14  ;;  %p802_p6 = scmp.lt.u32.totalorder %s798_s14, %s1445_s3 }
 0x254   :  { %p804_p7 = pnand %p802_p6, %p799_p5 }
 0x256   :  { %807 = shalt.err (!%p804_p7)
}
 0x257   :  { %s817_s19 = smov 128   ;;  %s818_s20 = smov 8  }
 0x258   :  { %678 = dma.vmem_to_hbm [thread:$0]  %s673_s11, 512, %s1445_s3, [#allocation6], %s817_s19, %s817_s19, %s818_s20  }
 0x259   :  { %808 = dma.done.wait [#allocation6], 512  }
 0x25a   :  { %809 = vsyncadd [#allocation6], 4294966784 }
 0x25b   :  { %682 = vsyncpa [#allocation6], 1 }

</bundles_post_ra>
